<compile_context>
chip_gen: v6e
topology: v6e:2x2x1
jax: 0.10.0
libtpu: 0.0.40
codegen_flags: <defaults>
</compile_context>

<pallas_src>
import functools

import jax
import jax.numpy as jnp
from jax import lax
from jax.experimental import pallas as pl
from jax.experimental.pallas import tpu as pltpu


def _round_up(x, m):
    return (x + m - 1) // m * m


def _conv_block_kernel(pe_ref, po_ref, w_ref, gb_ref, u_ref, out_ref,
                       acc_ref, ss_ref, *, m_real, p, eps):
    """Two-phase fused conv + BN(train stats) + ReLU + maxpool(2) + dropout.

    grid = (2, R):  phase 0 accumulates BN statistics, phase 1 normalizes,
    pools and stores.  All tiles are lane-dense (last dim = C_pad, a multiple
    of 128).
    """
    phase = pl.program_id(0)
    r = pl.program_id(1)

    # ---- init the stats accumulator once -----------------------------------
    @pl.when((phase == 0) & (r == 0))
    def _init():
        acc_ref[...] = jnp.zeros_like(acc_ref)

    # ---- Conv1d as two MXU matmuls (even / odd output positions) ----------
    w = w_ref[...]                                                   # (CK_pad, C_pad) bf16
    conv_e = jnp.dot(pe_ref[...], w, preferred_element_type=jnp.float32)
    conv_o = jnp.dot(po_ref[...], w, preferred_element_type=jnp.float32)
    # each: (TILE_P, C_pad) f32.  Zero-padded patch rows give exactly-zero
    # conv rows, so they contribute nothing to sum / sum-of-squares.

    # ---- phase 0: one-pass BN statistics (sum, sum of squares) -------------
    @pl.when(phase == 0)
    def _accumulate():
        s = (jnp.sum(conv_e, axis=0, keepdims=True)
             + jnp.sum(conv_o, axis=0, keepdims=True))
        sq = (jnp.sum(conv_e * conv_e, axis=0, keepdims=True)
              + jnp.sum(conv_o * conv_o, axis=0, keepdims=True))
        acc_ref[0:1, :] += s
        acc_ref[1:2, :] += sq

    # ---- phase 1, first tile: fold BN into one scale/shift pair ------------
    @pl.when((phase == 1) & (r == 0))
    def _finalize_stats():
        inv_m = 1.0 / m_real
        mean = acc_ref[0:1, :] * inv_m
        var = jnp.maximum(acc_ref[1:2, :] * inv_m - mean * mean, 0.0)
        inv = lax.rsqrt(var + eps)
        scale = gb_ref[0:1, :] * inv                 # gamma * rsqrt(var+eps)
        ss_ref[0:1, :] = scale
        ss_ref[1:2, :] = gb_ref[1:2, :] - mean * scale   # beta - mean*scale

    # ---- phase 1: normalize + ReLU + maxpool(2) + dropout, full-tile store -
    @pl.when(phase == 1)
    def _apply():
        scale = ss_ref[0:1, :]
        shift = ss_ref[1:2, :]
        y_e = jnp.maximum(conv_e * scale + shift, 0.0)
        y_o = jnp.maximum(conv_o * scale + shift, 0.0)
        ym = jnp.maximum(y_e, y_o)                   # MaxPool1d(2)
        keep = u_ref[...] >= p                       # inverted dropout
        ym = jnp.where(keep, ym * (1.0 / (1.0 - p)), 0.0)
        out_ref[...] = ym.astype(out_ref.dtype)


def conv_block_forward(x, filters, gamma, beta, *, stride=3, p=0.1, seed=0,
                       tile_p=256):
    """x: (N, C_in, L)  filters: (C_out, C_in, K)  ->  (N, C_out, L_out//2)."""
    N, C_in, L = x.shape
    C_out, C_in2, K = filters.shape
    assert C_in == C_in2
    L_out = (L - K) // stride + 1
    assert L_out >= 2, "need at least 2 conv output positions for MaxPool1d(2)"
    L_p = L_out // 2                 # pooled length (PyTorch drops the tail)
    L_half = (L_out + 1) // 2        # number of even-index conv positions

    CK = C_in * K
    CK_pad = _round_up(CK, 128)      # contraction dim, MXU/lane aligned
    C_pad = _round_up(C_out, 128)    # lane-dense channel axis

    # Row-tile of pooled positions; keep double-buffered bf16 patch tiles
    # within a modest VMEM budget (v7x has only 64 MiB of VMEM).
    budget = 8 * 1024 * 1024
    max_tile = max(16, (budget // (CK_pad * 2 * 2 * 2)) // 16 * 16)
    TILE_P = min(int(tile_p), max_tile, _round_up(L_half, 16))
    TILE_P = max(16, _round_up(TILE_P, 16))
    L_half_pad = _round_up(L_half, TILE_P)     # per-batch padded half-length
    R = N * (L_half_pad // TILE_P)             # row tiles (never straddle a batch)

    # ---- im2col glue (plain JAX, wrapper side) ------------------------------
    starts = jnp.arange(L_out) * stride
    idx = starts[:, None] + jnp.arange(K)[None, :]                 # (L_out, K)
    patches = x[:, :, idx]                                         # (N, C_in, L_out, K)
    patches = jnp.transpose(patches, (0, 2, 1, 3)).reshape(N, L_out, CK)
    # pad the time axis so it splits cleanly into even/odd positions
    patches = jnp.pad(patches, ((0, 0), (0, 2 * L_half - L_out), (0, 0)))
    pe = patches[:, 0::2, :]                                       # (N, L_half, CK)
    po = patches[:, 1::2, :]                                       # (N, L_half, CK)
    pad_rows = L_half_pad - L_half
    pe = jnp.pad(pe, ((0, 0), (0, pad_rows), (0, CK_pad - CK)))
    po = jnp.pad(po, ((0, 0), (0, pad_rows), (0, CK_pad - CK)))
    pe = pe.reshape(N * L_half_pad, CK_pad).astype(jnp.bfloat16)
    po = po.reshape(N * L_half_pad, CK_pad).astype(jnp.bfloat16)

    w_mat = jnp.transpose(filters, (1, 2, 0)).reshape(CK, C_out)
    w_mat = jnp.pad(w_mat, ((0, CK_pad - CK), (0, C_pad - C_out))).astype(jnp.bfloat16)

    gb = jnp.stack([
        jnp.pad(gamma.astype(jnp.float32), (0, C_pad - C_out)),    # gamma (pad=0)
        jnp.pad(beta.astype(jnp.float32), (0, C_pad - C_out)),     # beta  (pad=0)
    ])                                                             # (2, C_pad)

    # Dropout uniforms, drawn once in the wrapper (deterministic via seed) and
    # applied inside the kernel fused with the pooled result.
    u = jax.random.uniform(jax.random.PRNGKey(seed), (N * L_half_pad, C_pad),
                           dtype=jnp.float32)

    kernel = functools.partial(_conv_block_kernel,
                               m_real=float(N * L_out), p=float(p), eps=1e-5)

    out = pl.pallas_call(
        kernel,
        out_shape=jax.ShapeDtypeStruct((N * L_half_pad, C_pad), jnp.float32),
        grid=(2, R),
        in_specs=[
            pl.BlockSpec((TILE_P, CK_pad), lambda ph, r: (r, 0)),       # even patches
            pl.BlockSpec((TILE_P, CK_pad), lambda ph, r: (r, 0)),       # odd patches
            pl.BlockSpec((CK_pad, C_pad), lambda ph, r: (0, 0)),        # weights (resident)
            pl.BlockSpec((2, C_pad), lambda ph, r: (0, 0)),             # gamma/beta
            pl.BlockSpec((TILE_P, C_pad), lambda ph, r: (ph * r, 0)),   # dropout uniforms
        ],
        # phase 0 never writes the output; mapping it to block 0 during phase 0
        # keeps the pipeline from writing back untouched tiles.
        out_specs=pl.BlockSpec((TILE_P, C_pad), lambda ph, r: (ph * r, 0)),
        scratch_shapes=[
            pltpu.VMEM((2, C_pad), jnp.float32),   # [sum; sum_of_squares]
            pltpu.VMEM((2, C_pad), jnp.float32),   # [scale; shift]
        ],
        compiler_params=pltpu.CompilerParams(
            dimension_semantics=("arbitrary", "arbitrary")),
    )(pe, po, w_mat, gb, u)

    # back to PyTorch NCL layout, dropping channel / row padding
    out = out.reshape(N, L_half_pad, C_pad)[:, :L_p, :C_out]
    return jnp.transpose(out, (0, 2, 1))                           # (N, C_out, L_p)


def _reference_no_dropout(x, filters, gamma, beta, stride):
    """Pure-JAX reference (conv + train-mode BN + relu + maxpool), dropout off.

    Inputs are rounded to bf16 exactly as the kernel's MXU operands are, so the
    comparison isolates the kernel logic (f32 accumulation in both paths).
    """
    eps = 1e-5
    xb = x.astype(jnp.bfloat16).astype(jnp.float32)
    fb = filters.astype(jnp.bfloat16).astype(jnp.float32)
    conv = lax.conv_general_dilated(
        xb, fb, window_strides=(stride,), padding="VALID",
        dimension_numbers=("NCH", "OIH", "NCH"))
    mean = conv.mean(axis=(0, 2), keepdims=True)
    var = ((conv - mean) ** 2).mean(axis=(0, 2), keepdims=True)
    y = (conv - mean) / jnp.sqrt(var + eps) * gamma[None, :, None] + beta[None, :, None]
    y = jnp.maximum(y, 0.0)
    N, C, L_out = y.shape
    L_p = L_out // 2
    return y[:, :, :2 * L_p].reshape(N, C, L_p, 2).max(axis=-1)


if __name__ == "__main__":
    key = jax.random.PRNGKey(0)
    k1, k2, k3 = jax.random.split(key, 3)

    N, C_in, L = 2, 4, 32
    C_out, K, stride = 8, 5, 3

    x = jax.random.normal(k1, (N, C_in, L), dtype=jnp.float32)
    filters = 0.1 * jax.random.normal(k2, (C_out, C_in, K), dtype=jnp.float32)
    # BatchNorm1d affine params, PyTorch defaults (gamma=1, beta=0).
    gamma = jnp.ones((C_out,), jnp.float32)
    beta = jnp.zeros((C_out,), jnp.float32)

    # Deterministic part (dropout p=0) vs pure-JAX reference, even L_out.
    out_nodrop = conv_block_forward(x, filters, gamma, beta, stride=stride, p=0.0)
    ref = _reference_no_dropout(x, filters, gamma, beta, stride)
    assert out_nodrop.shape == ref.shape, (out_nodrop.shape, ref.shape)
    assert bool(jnp.allclose(out_nodrop, ref, rtol=1e-3, atol=1e-3)), "mismatch (even L_out)"

    # Odd L_out case (exercises the BN-stats tail / pool-drop path).
    x2 = jax.random.normal(k3, (N, C_in, 35), dtype=jnp.float32)
    out2 = conv_block_forward(x2, filters, gamma, beta, stride=stride, p=0.0)
    ref2 = _reference_no_dropout(x2, filters, gamma, beta, stride)
    assert out2.shape == ref2.shape, (out2.shape, ref2.shape)
    assert bool(jnp.allclose(out2, ref2, rtol=1e-3, atol=1e-3)), "mismatch (odd L_out)"

    # Full forward with training-mode dropout (deterministic seed).
    out = conv_block_forward(x, filters, gamma, beta, stride=stride, p=0.1, seed=0)
    jax.block_until_ready(out)
    L_p = ((L - K) // stride + 1) // 2
    assert out.shape == (N, C_out, L_p), out.shape
    assert bool(jnp.all(jnp.isfinite(out)))
    print("KERNEL_OK")
</pallas_src>

<mosaic_0001>
module attributes {stable_mosaic.version = 11 : i64} {
  func.func @_conv_block_kernel(%arg0: i32, %arg1: i32, %arg2: memref<16x128xbf16, #tpu.memory_space<vmem>>, %arg3: memref<16x128xbf16, #tpu.memory_space<vmem>>, %arg4: memref<128x128xbf16, #tpu.memory_space<vmem>>, %arg5: memref<2x128xf32, #tpu.memory_space<vmem>>, %arg6: memref<16x128xf32, #tpu.memory_space<vmem>>, %arg7: memref<16x128xf32, #tpu.memory_space<vmem>>, %arg8: memref<2x128xf32, #tpu.memory_space<vmem>>, %arg9: memref<2x128xf32, #tpu.memory_space<vmem>>) attributes {dimension_semantics = [#tpu.dimension_semantics<arbitrary>, #tpu.dimension_semantics<arbitrary>], iteration_bounds = array<i64: 2, 2>, scalar_prefetch = 0 : i64, scratch_operands = 2 : i64, tpu.core_type = #tpu.core_type<tc>, window_params = [{transform_indices = @transform_0, window_bounds = array<i64: 16, 128>}, {transform_indices = @transform_1, window_bounds = array<i64: 16, 128>}, {pipeline_mode = #tpu.pipeline_mode<synchronous>, transform_indices = @transform_2, window_bounds = array<i64: 128, 128>}, {pipeline_mode = #tpu.pipeline_mode<synchronous>, transform_indices = @transform_3, window_bounds = array<i64: 2, 128>}, {transform_indices = @transform_4, window_bounds = array<i64: 16, 128>}, {transform_indices = @transform_5, window_bounds = array<i64: 16, 128>}]} {
    %c0_i32 = arith.constant 0 : i32
    %0 = arith.cmpi eq, %arg0, %c0_i32 : i32
    %c0_i32_0 = arith.constant 0 : i32
    %1 = arith.cmpi eq, %arg1, %c0_i32_0 : i32
    %2 = arith.andi %0, %1 : i1
    %3 = arith.extui %2 : i1 to i32
    %c0_i32_1 = arith.constant 0 : i32
    %4 = arith.cmpi ne, %3, %c0_i32_1 : i32
    scf.if %4 {
      %cst_14 = arith.constant 0.000000e+00 : f32
      %21 = vector.broadcast %cst_14 : f32 to vector<2x128xf32>
      %c0_15 = arith.constant 0 : index
      %c0_16 = arith.constant 0 : index
      %22 = vector.load %arg8[%c0_15, %c0_16] : memref<2x128xf32, #tpu.memory_space<vmem>>, vector<2x128xf32>
      tpu.vector_store %arg8[%c0_15, %c0_16], %21 {strides = array<i32>} : memref<2x128xf32, #tpu.memory_space<vmem>>, vector<2x128xf32>,
    } else {
    }
    %c0 = arith.constant 0 : index
    %c0_2 = arith.constant 0 : index
    %5 = vector.load %arg4[%c0, %c0_2] : memref<128x128xbf16, #tpu.memory_space<vmem>>, vector<128x128xbf16>
    %c0_3 = arith.constant 0 : index
    %c0_4 = arith.constant 0 : index
    %6 = vector.load %arg2[%c0_3, %c0_4] : memref<16x128xbf16, #tpu.memory_space<vmem>>, vector<16x128xbf16>
    %cst = arith.constant dense<0.000000e+00> : vector<16x128xf32>
    %7 = tpu.matmul %6, %5, %cst {dimension_numbers = #tpu.dot_dimension_numbers<[1], [0], [0], [1], [0, 0, 1, 1], [], []>} : vector<16x128xbf16>, vector<128x128xbf16>, vector<16x128xf32> -> vector<16x128xf32>
    %c0_5 = arith.constant 0 : index
    %c0_6 = arith.constant 0 : index
    %8 = vector.load %arg3[%c0_5, %c0_6] : memref<16x128xbf16, #tpu.memory_space<vmem>>, vector<16x128xbf16>
    %cst_7 = arith.constant dense<0.000000e+00> : vector<16x128xf32>
    %9 = tpu.matmul %8, %5, %cst_7 {dimension_numbers = #tpu.dot_dimension_numbers<[1], [0], [0], [1], [0, 0, 1, 1], [], []>} : vector<16x128xbf16>, vector<128x128xbf16>, vector<16x128xf32> -> vector<16x128xf32>
    %c0_i32_8 = arith.constant 0 : i32
    %10 = arith.cmpi eq, %arg0, %c0_i32_8 : i32
    %11 = arith.extui %10 : i1 to i32
    %c0_i32_9 = arith.constant 0 : i32
    %12 = arith.cmpi ne, %11, %c0_i32_9 : i32
    scf.if %12 {
      %cst_14 = arith.constant dense<0.000000e+00> : vector<128xf32>
      %21 = vector.multi_reduction <add>, %7, %cst_14 [0] : vector<16x128xf32> to vector<128xf32>
      %22 = vector.shape_cast %21 : vector<128xf32> to vector<1x128xf32>
      %cst_15 = arith.constant dense<0.000000e+00> : vector<128xf32>
      %23 = vector.multi_reduction <add>, %9, %cst_15 [0] : vector<16x128xf32> to vector<128xf32>
      %24 = vector.shape_cast %23 : vector<128xf32> to vector<1x128xf32>
      %25 = arith.addf %22, %24 : vector<1x128xf32>
      %26 = arith.mulf %7, %7 : vector<16x128xf32>
      %cst_16 = arith.constant dense<0.000000e+00> : vector<128xf32>
      %27 = vector.multi_reduction <add>, %26, %cst_16 [0] : vector<16x128xf32> to vector<128xf32>
      %28 = vector.shape_cast %27 : vector<128xf32> to vector<1x128xf32>
      %29 = arith.mulf %9, %9 : vector<16x128xf32>
      %cst_17 = arith.constant dense<0.000000e+00> : vector<128xf32>
      %30 = vector.multi_reduction <add>, %29, %cst_17 [0] : vector<16x128xf32> to vector<128xf32>
      %31 = vector.shape_cast %30 : vector<128xf32> to vector<1x128xf32>
      %32 = arith.addf %28, %31 : vector<1x128xf32>
      %c0_18 = arith.constant 0 : index
      %c0_19 = arith.constant 0 : index
      %33 = vector.load %arg8[%c0_18, %c0_19] : memref<2x128xf32, #tpu.memory_space<vmem>>, vector<1x128xf32>
      %34 = arith.addf %33, %25 : vector<1x128xf32>
      %c0_20 = arith.constant 0 : index
      %c0_21 = arith.constant 0 : index
      %35 = vector.load %arg8[%c0_20, %c0_21] : memref<2x128xf32, #tpu.memory_space<vmem>>, vector<1x128xf32>
      tpu.vector_store %arg8[%c0_20, %c0_21], %34 {strides = array<i32>} : memref<2x128xf32, #tpu.memory_space<vmem>>, vector<1x128xf32>,
      %c1 = arith.constant 1 : index
      %c0_22 = arith.constant 0 : index
      %36 = vector.load %arg8[%c1, %c0_22] : memref<2x128xf32, #tpu.memory_space<vmem>>, vector<1x128xf32>
      %37 = arith.addf %36, %32 : vector<1x128xf32>
      %c1_23 = arith.constant 1 : index
      %c0_24 = arith.constant 0 : index
      %38 = vector.load %arg8[%c1_23, %c0_24] : memref<2x128xf32, #tpu.memory_space<vmem>>, vector<1x128xf32>
      tpu.vector_store %arg8[%c1_23, %c0_24], %37 {strides = array<i32>} : memref<2x128xf32, #tpu.memory_space<vmem>>, vector<1x128xf32>,
    } else {
    }
    %c1_i32 = arith.constant 1 : i32
    %13 = arith.cmpi eq, %arg0, %c1_i32 : i32
    %c0_i32_10 = arith.constant 0 : i32
    %14 = arith.cmpi eq, %arg1, %c0_i32_10 : i32
    %15 = arith.andi %13, %14 : i1
    %16 = arith.extui %15 : i1 to i32
    %c0_i32_11 = arith.constant 0 : i32
    %17 = arith.cmpi ne, %16, %c0_i32_11 : i32
    scf.if %17 {
      %c0_14 = arith.constant 0 : index
      %c0_15 = arith.constant 0 : index
      %21 = vector.load %arg8[%c0_14, %c0_15] : memref<2x128xf32, #tpu.memory_space<vmem>>, vector<1x128xf32>
      %cst_16 = arith.constant 5.000000e-02 : f32
      %22 = vector.broadcast %cst_16 : f32 to vector<1x128xf32>
      %23 = arith.mulf %21, %22 : vector<1x128xf32>
      %c1 = arith.constant 1 : index
      %c0_17 = arith.constant 0 : index
      %24 = vector.load %arg8[%c1, %c0_17] : memref<2x128xf32, #tpu.memory_space<vmem>>, vector<1x128xf32>
      %cst_18 = arith.constant 5.000000e-02 : f32
      %25 = vector.broadcast %cst_18 : f32 to vector<1x128xf32>
      %26 = arith.mulf %24, %25 : vector<1x128xf32>
      %27 = arith.mulf %23, %23 : vector<1x128xf32>
      %28 = arith.subf %26, %27 : vector<1x128xf32>
      %cst_19 = arith.constant 0.000000e+00 : f32
      %29 = vector.broadcast %cst_19 : f32 to vector<1x128xf32>
      %30 = arith.maximumf %28, %29 : vector<1x128xf32>
      %cst_20 = arith.constant 9.99999974E-6 : f32
      %31 = vector.broadcast %cst_20 : f32 to vector<1x128xf32>
      %32 = arith.addf %30, %31 : vector<1x128xf32>
      %33 = math.rsqrt %32 : vector<1x128xf32>
      %c0_21 = arith.constant 0 : index
      %c0_22 = arith.constant 0 : index
      %34 = vector.load %arg5[%c0_21, %c0_22] : memref<2x128xf32, #tpu.memory_space<vmem>>, vector<1x128xf32>
      %35 = arith.mulf %34, %33 : vector<1x128xf32>
      %c0_23 = arith.constant 0 : index
      %c0_24 = arith.constant 0 : index
      %36 = vector.load %arg9[%c0_23, %c0_24] : memref<2x128xf32, #tpu.memory_space<vmem>>, vector<1x128xf32>
      tpu.vector_store %arg9[%c0_23, %c0_24], %35 {strides = array<i32>} : memref<2x128xf32, #tpu.memory_space<vmem>>, vector<1x128xf32>,
      %c1_25 = arith.constant 1 : index
      %c0_26 = arith.constant 0 : index
      %37 = vector.load %arg5[%c1_25, %c0_26] : memref<2x128xf32, #tpu.memory_space<vmem>>, vector<1x128xf32>
      %38 = arith.mulf %23, %35 : vector<1x128xf32>
      %39 = arith.subf %37, %38 : vector<1x128xf32>
      %c1_27 = arith.constant 1 : index
      %c0_28 = arith.constant 0 : index
      %40 = vector.load %arg9[%c1_27, %c0_28] : memref<2x128xf32, #tpu.memory_space<vmem>>, vector<1x128xf32>
      tpu.vector_store %arg9[%c1_27, %c0_28], %39 {strides = array<i32>} : memref<2x128xf32, #tpu.memory_space<vmem>>, vector<1x128xf32>,
    } else {
    }
    %c1_i32_12 = arith.constant 1 : i32
    %18 = arith.cmpi eq, %arg0, %c1_i32_12 : i32
    %19 = arith.extui %18 : i1 to i32
    %c0_i32_13 = arith.constant 0 : i32
    %20 = arith.cmpi ne, %19, %c0_i32_13 : i32
    scf.if %20 {
      %c0_14 = arith.constant 0 : index
      %c0_15 = arith.constant 0 : index
      %21 = vector.load %arg9[%c0_14, %c0_15] : memref<2x128xf32, #tpu.memory_space<vmem>>, vector<1x128xf32>
      %c1 = arith.constant 1 : index
      %c0_16 = arith.constant 0 : index
      %22 = vector.load %arg9[%c1, %c0_16] : memref<2x128xf32, #tpu.memory_space<vmem>>, vector<1x128xf32>
      %23 = vector.broadcast %21 : vector<1x128xf32> to vector<16x128xf32>
      %24 = arith.mulf %7, %23 : vector<16x128xf32>
      %25 = vector.broadcast %22 : vector<1x128xf32> to vector<16x128xf32>
      %26 = arith.addf %24, %25 : vector<16x128xf32>
      %cst_17 = arith.constant 0.000000e+00 : f32
      %27 = vector.broadcast %cst_17 : f32 to vector<16x128xf32>
      %28 = arith.maximumf %26, %27 : vector<16x128xf32>
      %29 = vector.broadcast %21 : vector<1x128xf32> to vector<16x128xf32>
      %30 = arith.mulf %9, %29 : vector<16x128xf32>
      %31 = vector.broadcast %22 : vector<1x128xf32> to vector<16x128xf32>
      %32 = arith.addf %30, %31 : vector<16x128xf32>
      %cst_18 = arith.constant 0.000000e+00 : f32
      %33 = vector.broadcast %cst_18 : f32 to vector<16x128xf32>
      %34 = arith.maximumf %32, %33 : vector<16x128xf32>
      %35 = arith.maximumf %28, %34 : vector<16x128xf32>
      %c0_19 = arith.constant 0 : index
      %c0_20 = arith.constant 0 : index
      %36 = vector.load %arg6[%c0_19, %c0_20] : memref<16x128xf32, #tpu.memory_space<vmem>>, vector<16x128xf32>
      %cst_21 = arith.constant 0.000000e+00 : f32
      %37 = vector.broadcast %cst_21 : f32 to vector<16x128xf32>
      %38 = arith.cmpf oge, %36, %37 : vector<16x128xf32>
      %cst_22 = arith.constant 1.000000e+00 : f32
      %39 = vector.broadcast %cst_22 : f32 to vector<16x128xf32>
      %40 = arith.mulf %35, %39 : vector<16x128xf32>
      %cst_23 = arith.constant 0.000000e+00 : f32
      %41 = vector.broadcast %cst_23 : f32 to vector<16x128xf32>
      %42 = arith.select %38, %40, %41 : vector<16x128xi1>, vector<16x128xf32>
      %c0_24 = arith.constant 0 : index
      %c0_25 = arith.constant 0 : index
      %43 = vector.load %arg7[%c0_24, %c0_25] : memref<16x128xf32, #tpu.memory_space<vmem>>, vector<16x128xf32>
      tpu.vector_store %arg7[%c0_24, %c0_25], %42 {strides = array<i32>} : memref<16x128xf32, #tpu.memory_space<vmem>>, vector<16x128xf32>,
    } else {
    }
    return
  }
  func.func @transform_0(%arg0: i32, %arg1: i32) -> (i32, i32) {
    %c0_i32 = arith.constant 0 : i32
    %c0_i32_0 = arith.constant 0 : i32
    return %arg1, %c0_i32 : i32, i32
  }
  func.func @transform_1(%arg0: i32, %arg1: i32) -> (i32, i32) {
    %c0_i32 = arith.constant 0 : i32
    %c0_i32_0 = arith.constant 0 : i32
    return %arg1, %c0_i32 : i32, i32
  }
  func.func @transform_2(%arg0: i32, %arg1: i32) -> (i32, i32) {
    %c0_i32 = arith.constant 0 : i32
    %c0_i32_0 = arith.constant 0 : i32
    %c0_i32_1 = arith.constant 0 : i32
    return %c0_i32, %c0_i32_0 : i32, i32
  }
  func.func @transform_3(%arg0: i32, %arg1: i32) -> (i32, i32) {
    %c0_i32 = arith.constant 0 : i32
    %c0_i32_0 = arith.constant 0 : i32
    %c0_i32_1 = arith.constant 0 : i32
    return %c0_i32, %c0_i32_0 : i32, i32
  }
  func.func @transform_4(%arg0: i32, %arg1: i32) -> (i32, i32) {
    %0 = arith.muli %arg0, %arg1 : i32
    %c0_i32 = arith.constant 0 : i32
    %c0_i32_0 = arith.constant 0 : i32
    return %0, %c0_i32 : i32, i32
  }
  func.func @transform_5(%arg0: i32, %arg1: i32) -> (i32, i32) {
    %0 = arith.muli %arg0, %arg1 : i32
    %c0_i32 = arith.constant 0 : i32
    %c0_i32_0 = arith.constant 0 : i32
    return %0, %c0_i32 : i32, i32
  }
}

</mosaic_0001>

<bundles_post_ra>
// kernel: tpu_custom_call.1
= control target key start
LH: loop header
LB: loop body
LE: loop exit
PB: predicated region body
PF: predicated region fallthrough
CT: control target
= control target key end

     0   :  { %s1669_s0 = inlined_call_operand.hbm [shape: bf16[32,128], index: 0, kind: input, shape index: {}]   ;;  %s1670_s1 = inlined_call_operand.hbm [shape: bf16[32,128], index: 1, kind: input, shape index: {}]   ;;  %s1671_s2 = inlined_call_operand.hbm [shape: bf16[128,128], index: 2, kind: input, shape index: {}]   ;;  %s1672_s3 = inlined_call_operand.vmem [shape: f32[2,128], index: 3, kind: input, shape index: {}]   ;;  %s1673_s4 = inlined_call_operand.hbm [shape: f32[32,128], index: 4, kind: input, shape index: {}]   ;;  %s1674_s5 = inlined_call_operand.hbm [shape: f32[32,128], index: 5, kind: output, shape index: {}]  }
   0x1   :  { %1689 = sst [smem:[#allocation22_spill]] %s1669_s0 }
   0x2   :  { %1690 = sst [smem:[#allocation23_spill]] %s1670_s1 }
   0x3   :  { %1691 = sst [smem:[#allocation24_spill]] %s1671_s2 }
   0x4   :  { %1692 = sst [smem:[#allocation25_spill]] %s1672_s3 }
   0x5   :  { %1693 = sst [smem:[#allocation26_spill]] %s1674_s5 }
   0x6   :  { %10 = vsyncpa [#allocation5], 0 }
   0x7   :  { %12 = vsyncpa [#allocation5 + $0x1], 0 }
   0x8   :  { %13 = vsyncpa [#allocation8], 0 }
   0x9   :  { %15 = vsyncpa [#allocation8 + $0x1], 0 }
   0xa   :  { %16 = vsyncpa [#allocation11], 0 }
   0xb   :  { %18 = vsyncpa [#allocation11 + $0x1], 0 }
   0xc   :  { %19 = vsyncpa [#allocation6], 0 }
   0xd   :  { %21 = vsyncpa [#allocation6 + $0x1], 0  ;;  %s1316_s18 = smov 0   ;;  %s1318_s19 = smov 0  }
   0xe   :  { %s1320_s20 = smov 0   ;;  %s1322_s21 = smov 0  }
   0xf   :  { %s1324_s22 = smov 0   ;;  %s1326_s23 = smov 0  }
  0x10   :  { %s1328_s24 = smov 0   ;;  %s1330_s25 = smov 0  }
  0x11   :  { %s1332_s26 = smov 0   ;;  %s1334_s27 = smov 0  }
  0x12   :  { %s1336_s28 = smov 0  }
  0x13 LB: > { %1694 = sst [smem:[#allocation18_spill]] %s1230_s18  ;;  %s1370_s29 = sadd.s32 4294967295, %s1270_s28   ;;  %s1270_s28 = sphi %s1336_s28, %s27_s28   ;;  %s1266_s27 = sphi %s1334_s27, %s1736_s27   ;;  %s1262_s26 = sphi %s1332_s26, %s1735_s26   ;;  %s1258_s25 = sphi %s1330_s25, %s1734_s25   ;;  %s1254_s24 = sphi %s1328_s24, %s1733_s24   ;;  %s1250_s23 = sphi %s1326_s23, %s1732_s23   ;;  %s1246_s22 = sphi %s1324_s22, %s1731_s22   ;;  %s1242_s21 = sphi %s1322_s21, %s1730_s21   ;;  %s1238_s20 = sphi %s1320_s20, %s1729_s20   ;;  %s1234_s19 = sphi %s1318_s19, %s1728_s19   ;;  %s1230_s18 = sphi %s1316_s18, %s1727_s18  }
  0x14   : > { %s784_s30 = sadd.s32 4294967294, %s1270_s28   ;;  %p59_p0 = scmp.ne.s32.totalorder %s1246_s22, %s1242_s21 }
  0x15   : > { %p1684_p1 = scmp.eq.s32.totalorder %s1370_s29, 0  ;;  %p155_p2 = scmp.ne.s32.totalorder %s1234_s19, %s1230_s18 }
  0x16   : > { %p187_p5 = scmp.eq.s32.totalorder %s784_s30, 3  ;;  %p785_p7 = scmp.ge.s32.totalorder %s1270_s28, 1 }
  0x17   : > { %p1380_p4 = por %p1684_p1, %p59_p0  ;;  %p1386_p6 = por %p155_p2, %p1684_p1 }
  0x18   : > { %p1391_p8 = por %p187_p5, %p155_p2  ;;  %p194_p9 = scmp.lt.s32.totalorder %s1270_s28, 5 }
  0x19   : > { %s1272_s10 = smov [#allocation9]   ;;  %s1679_s13 = sadd.s32 1, %s1262_s26 }
  0x1a   : > { %s1697_s8 = scalar_select %p1391_p8, 1, 0 }
  0x1b   : > { %p1396_p10 = pnand %p785_p7, %p194_p9  ;;  %s206_s11 = sshll.u32 %s1272_s10, 4  ;;  %s207_s11 = int_to_ptr.vmem [resolvable:$true] %s206_s11 }
  0x1c   : > { %1698 = sst [smem:[#allocation19_spill]] %s1697_s8  ;;  %s1039_s14 = scalar_lea.vmem %s207_s11, 1024 }
  0x1d   : > { %p896_p11 = pneg %p1396_p10  ;;  %p1040_p0 = scmp.ne.s32.totalorder %s207_s11, %s1039_s14 }
  0x1e   : > { %p1047_p7 = scmp.lt.s32.totalorder %s207_s11, %s207_s11  ;;  %p1048_p9 = scmp.lt.s32.totalorder %s1039_s14, %s1039_s14 }
  0x1f   : > { %p1404_p12 = pnand %p896_p11, %p1684_p1 }
  0x20   : > { %p1049_p3 = por %p1048_p9, %p1047_p7 }
  0x21   : > { %p1030_p13 = pneg %p1404_p12 }
  0x23   : > { %p1042_p2 = pnand %p1040_p0, %p1030_p13 }
  0x25   : > { %p1043_p5 = pneg %p1042_p2 }
  0x27   : > { %p1050_p8 = pnand %p1049_p3, %p1043_p5 }
  0x29   : > { %1053 = shalt.err (!%p1050_p8)
}
  0x2a   : > { %s1680_s15 = smov 64   ;;  %s1682_s16 = smov 4  }
  0x2b   : > { %s1701_s2 = sld [smem:[#allocation24_spill]]  ;;  %p1421_p3 = scmp.ge.s32.totalorder %s1679_s13, 2 }
  0x2c   : > { %p53_p8 = scmp.ne.s32.totalorder %s1250_s23, %s1246_s22  ;;  %p54_p11 = scmp.eq.s32.totalorder %s1270_s28, 0 }
  0x2d   : > { %p1685_p13 = scmp.lt.s32.totalorder %s1270_s28, 4  ;;  %s223_s14 = sand.u32 1, %s1250_s23  }
  0x2e   : > { %p55_p0 = por %p54_p11, %p53_p8  ;;  %s788_s12 = sshll.u32 %s223_s14, 3 }
  0x2f   : > { %s822_s8 = sshll.u32 %s1262_s26, 7  ;;  %s1703_s0 = sld [smem:[#allocation22_spill]] }
  0x30   : > { %s227_s17 = scalar_lea.vmem [#allocation4], %s788_s12  ;;  %s1705_s1 = sld [smem:[#allocation23_spill]] }
  0x31   : > { %899 = dma.hbm_to_vmem [thread:$0]  (!%p1404_p12), %s1701_s2, 1024, %s207_s11, [#allocation8], %s1680_s15, %s1680_s15, %s1682_s16  }
  0x32   : > { %s234_s11 = sshll.u32 %s227_s17, 4  ;;  %p1439_p12 = pnand %p1685_p13, %p55_p0  ;;  %s235_s11 = int_to_ptr.vmem [resolvable:$true] %s234_s11 }
  0x33   : > { %s224_s16 = scalar_lea.sflag [#allocation5], %s223_s14  ;;  %s1067_s5 = scalar_lea.vmem %s235_s11, 128 }
  0x34   : > { %p1056_p2 = pneg %p1439_p12  ;;  %p1068_p5 = scmp.ne.s32.totalorder %s235_s11, %s1067_s5 }
  0x35   : > { %s233_s3 = scalar_lea.hbm %s1703_s0, %s822_s8  ;;  %s1275_s18 = smov [#allocation4]  }
  0x36   : > { %s1446_s15 = scalar_lea.hbm %s1705_s1, %s822_s8  ;;  %p1070_p7 = pnand %p1068_p5, %p1056_p2 }
  0x37   : > { %s1072_s17 = sshll.u32 %s1275_s18, 4  ;;  %s1073_s17 = int_to_ptr.vmem [resolvable:$false] %s1072_s17 }
  0x38   : > { %p1071_p9 = pneg %p1070_p7  ;;  %s1074_s0 = scalar_lea.vmem %s1073_s17, 256 }
  0x39   : > { %p1075_p8 = scmp.lt.s32.totalorder %s235_s11, %s1073_s17  ;;  %p1076_p0 = scmp.lt.s32.totalorder %s1074_s0, %s1067_s5 }
  0x3b   : > { %p1077_p1 = por %p1076_p0, %p1075_p8 }
  0x3d   : > { %p1078_p13 = pnand %p1077_p1, %p1071_p9 }
  0x3f   : > { %1081 = shalt.err (!%p1078_p13)
}
  0x40   : > { %s1706_s8 = smov 4   ;;  %s1707_s13 = smov 64  }
  0x41   : > { %903 = dma.hbm_to_vmem [thread:$0]  (!%p1439_p12), %s233_s3, 128, %s235_s11, %s224_s16, %s1707_s13, %s1707_s13, %s1706_s8  }
  0x42   : > { %s248_s10 = scalar_lea.vmem [#allocation7], %s788_s12  ;;  %s244_s1 = sand.u32 1, %s1270_s28  }
  0x43   : > { %s255_s14 = sshll.u32 %s248_s10, 4  ;;  %s245_s18 = scalar_lea.sflag [#allocation8], %s244_s1  ;;  %s256_s14 = int_to_ptr.vmem [resolvable:$true] %s255_s14 }
  0x44   : > { %s1095_s2 = scalar_lea.vmem %s256_s14, 128  ;;  %s1276_s0 = smov [#allocation7]  }
  0x45   : > { %p1096_p5 = scmp.ne.s32.totalorder %s256_s14, %s1095_s2  ;;  %s1100_s5 = sshll.u32 %s1276_s0, 4  ;;  %s1101_s5 = int_to_ptr.vmem [resolvable:$false] %s1100_s5 }
  0x46   : > { %s1102_s17 = scalar_lea.vmem %s1101_s5, 256  ;;  %p1103_p13 = scmp.lt.s32.totalorder %s256_s14, %s1101_s5 }
  0x47   : > { %p1098_p7 = pnand %p1096_p5, %p1056_p2  ;;  %p1104_p9 = scmp.lt.s32.totalorder %s1102_s17, %s1095_s2 }
  0x49   : > { %p1099_p1 = pneg %p1098_p7  ;;  %p1105_p8 = por %p1104_p9, %p1103_p13 }
  0x4b   : > { %p1106_p0 = pnand %p1105_p8, %p1099_p1 }
  0x4d   : > { %1109 = shalt.err (!%p1106_p0)
}
  0x4e   : > { %906 = dma.hbm_to_vmem [thread:$0]  (!%p1439_p12), %s1446_s15, 128, %s256_s14, %s245_s18, %s1707_s13, %s1707_s13, %s1706_s8  }
  0x4f   : > { %s1708_s1 = sadd.s32 1, %s1262_s26  ;;  %s39_s2 = sadd.s32 1, %s1266_s27 }
  0x50   : > { %s1738_s1 = smov (%p1421_p3, %s1708_s1), 0  ;;  %s137_s3 = smul.u32 %s1262_s26, %s1266_s27 }
  0x51   : > { %1709 = sst [smem:[#allocation20_spill]] %s1738_s1  ;;  %s1740_s2 = smov (!%p1421_p3, %s39_s2), %s1266_s27 }
  0x52   : > { %s43_s16 = ssub.s32 %s1262_s26, %s1738_s1  ;;  %s142_s12 = sadd.s32 1, %s1238_s20 }
  0x53   : > { %p41_p2 = scmp.ge.s32.totalorder %s1740_s2, 2  ;;  %p44_p5 = scmp.eq.s32.totalorder %s43_s16, 0 }
  0x54   : > { %p149_p7 = scmp.ne.s32.totalorder %s1238_s20, %s1234_s19  ;;  %s265_s11 = sand.u32 1, %s1238_s20  }
  0x55   : > { %s1742_s2 = smov (%p41_p2, %s1740_s2), 0  ;;  %s1711_s15 = sadd.s32 1, %s1250_s23 }
  0x56   : > { %1710 = sst [smem:[#allocation21_spill]] %s1742_s2  ;;  %s138_s8 = smul.u32 %s1742_s2, %s1738_s1 }
  0x57   : > { %s1491_s21 = scalar_select %p44_p5, %s1250_s23, %s1711_s15  }
  0x58   : > { %p151_p12 = por %p149_p7, %p54_p11  ;;  %p1712_p1 = scmp.eq.s32.totalorder %s1370_s29, 3 }
  0x59   : > { %s139_s13 = ssub.s32 %s137_s3, %s138_s8  ;;  %s794_s10 = sshll.u32 %s265_s11, 4 }
  0x5a   : > { %p1499_p13 = por %p1712_p1, %p149_p7  ;;  %p140_p3 = scmp.eq.s32.totalorder %s139_s13, 0 }
  0x5b   : > { %s824_s14 = sshll.u32 %s137_s3, 8  ;;  %s269_s18 = scalar_lea.vmem [#allocation10], %s794_s10 }
  0x5c   : > { %s1713_s30 = scalar_select %p1499_p13, 1, 0 }
  0x5d   : > { %s277_s0 = sshll.u32 %s269_s18, 4  ;;  %s276_s15 = scalar_lea.hbm %s1673_s4, %s824_s14  ;;  %s278_s0 = int_to_ptr.vmem [resolvable:$true] %s277_s0 }
  0x5e   : > { %s1504_s5 = scalar_select %p140_p3, %s1238_s20, %s142_s12  }
  0x5f   : > { %p1714_p9 = scmp.lt.s32.totalorder %s1270_s28, 4  ;;  %s266_s1 = scalar_lea.sflag [#allocation11], %s265_s11 }
  0x60   : > { %s1123_s8 = scalar_lea.vmem %s278_s0, 256  ;;  %s1277_s3 = smov [#allocation10]  }
  0x61   : > { %p1511_p11 = pnand %p1714_p9, %p151_p12  ;;  %p1124_p0 = scmp.ne.s32.totalorder %s278_s0, %s1123_s8 }
  0x62   : > { %s1128_s12 = sshll.u32 %s1277_s3, 4  ;;  %s1129_s12 = int_to_ptr.vmem [resolvable:$false] %s1128_s12 }
  0x63   : > { %p1112_p8 = pneg %p1511_p11  ;;  %s1130_s13 = scalar_lea.vmem %s1129_s12, 512 }
  0x64   : > { %p1131_p7 = scmp.lt.s32.totalorder %s278_s0, %s1129_s12  ;;  %p1132_p1 = scmp.lt.s32.totalorder %s1130_s13, %s1123_s8 }
  0x65   : > { %p1126_p2 = pnand %p1124_p0, %p1112_p8 }
  0x66   : > { %p1133_p3 = por %p1132_p1, %p1131_p7 }
  0x67   : > { %p1127_p5 = pneg %p1126_p2 }
  0x69   : > { %p1134_p13 = pnand %p1133_p3, %p1127_p5 }
  0x6b   : > { %1137 = shalt.err (!%p1134_p13)
}
  0x6c   : > { %s1278_s10 = smov 128   ;;  %s1279_s14 = smov 8  }
  0x6d   : > { %909 = dma.hbm_to_vmem [thread:$0]  (!%p1511_p11), %s276_s15, 256, %s278_s0, %s266_s1, %s1278_s10, %s1278_s10, %s1279_s14  }
  0x6e   : > { %289 = sbr.rel (%p1396_p10) target bundleno = 477 (0x1dd), region = 40  ;;  %s291_s11 = sand.u32 (!%p1396_p10), 1, %s1246_s22  }
  0x6f   : > { %s1522_s18 = sshll.u32 (!%p1396_p10), %s291_s11, 3  ;;  %s292_s17 = scalar_lea.sflag (!%p1396_p10), [#allocation5], %s291_s11 }
  0x70   : > { %s295_s16 = scalar_lea.vmem (!%p1396_p10), [#allocation4], %s1522_s18 }
  0x73   : > { %1209 = dma.done.wait (%p1380_p4), %s292_s17, 128  }
  0x74   : > { %1211 = vsyncadd (%p1380_p4), %s292_s17, 4294967168  ;;  %s300_s1 = sand.u32 1, %s1370_s29   ;;  %s304_s9 = scalar_lea.vmem [#allocation7], %s1522_s18 }
  0x75   : > { %s301_s2 = scalar_lea.sflag [#allocation8], %s300_s1 }
  0x76   : > { %1213 = dma.done.wait (%p1380_p4), %s301_s2, 128  }
  0x77   : > { %1215 = vsyncadd (%p1380_p4), %s301_s2, 4294967168  ;;  %p1716_p10 = scmp.eq.s32.totalorder %s1370_s29, 0 }
  0x79   : > { %1217 = dma.done.wait (%p1716_p10), [#allocation8], 1024   ;;  %p1717_p12 = pmov %p1716_p10 }
  0x7a   : > { %s1540_s0 = sand.u32 1, %s1234_s19  }
  0x7b   : > { %1219 = vsyncadd (%p1717_p12), [#allocation8], 4294966272  ;;  %s801_s15 = sshll.u32 %s1540_s0, 4  ;;  %s314_s8 = scalar_lea.sflag [#allocation11], %s1540_s0 }
  0x7c   : > { %s1544_s3 = scalar_lea.vmem [#allocation10], %s801_s15 }
  0x7d   : > { %1221 = dma.done.wait (%p1386_p6), %s314_s8, 256  }
  0x7e   : > { %1223 = vsyncadd (%p1386_p6), %s314_s8, 4294967040  ;;  %p361_p4 = scmp.eq.s32.totalorder %s1258_s25, 0  ;;  %p362_p13 = scmp.eq.s32.totalorder %s1254_s24, 0 }
  0x7f   : > { %s1554_s29 = scalar_lea.vmem [#allocation12], %s801_s15 }
  0x80   : > { %p363_p9 = pnand %p362_p13, %p361_p4 }
  0x82   : > { %366 = sbr.rel (%p363_p9) target bundleno = 137 (0x89), region = 60 }
  0x87   : > { %v1280_v0 = vmov 0.0  }
  0x88   : > { %367 = vst [vmem:[#allocation2] sm:$0x3] %v1280_v0 }
  0x89 PF: > { %v1016_v1 = vld [vmem:[#allocation9 + $0x38] sm:$0xff]   ;;  %v1281_v2 = vmov 0.0   ;;  %v1017_v3 = vld [vmem:[#allocation9 + $0x30] sm:$0xff]   ;;  %vm1282_vm0 = vmmov 0   ;;  %v1018_v4 = vld [vmem:[#allocation9 + $0x28] sm:$0xff]   ;;  %p813_p6 = scmp.ne.s32.totalorder %s1258_s25, 0 }
  0x8a   : > { %844 = vmatprep.subr.bf16.mxu0 %v1281_v2  ;;  %864 = vmatprep.subr.bf16.mxu1 %v1281_v2  ;;  %v1019_v5 = vld [vmem:[#allocation9 + $0x20] sm:$0xff]   ;;  %v1020_v6 = vld [vmem:[#allocation9 + $0x18] sm:$0xff]   ;;  %v1021_v7 = vld [vmem:[#allocation9 + $0x10] sm:$0xff]  }
  0x8b   : > { %845 = vmatpush3.bf16.msra.mxu0 %v1016_v1  ;;  %865 = vmatpush3.bf16.msra.mxu1 %v1016_v1  ;;  %v1022_v8 = vld [vmem:[#allocation9 + $0x8] sm:$0xff]   ;;  %v1023_v9 = vld [vmem:[#allocation9] sm:$0xff]   ;;  %v1025_v11 = vld [vmem:[%s304_s9] sm:$0xff]  }
  0x8c   : > { %846 = vmatprep.subr.bf16.mxu0 %v1281_v2  ;;  %866 = vmatprep.subr.bf16.mxu1 %v1281_v2  ;;  %v1024_v10 = vld [vmem:[%s295_s16] sm:$0xff]  }
  0x8d   : > { %860 = vmatprep.mubr.msk.bf16.mxu0 %vm1282_vm0, %v1281_v2  ;;  %880 = vmatprep.mubr.msk.bf16.mxu1 %vm1282_vm0, %v1281_v2 }
  0x8f   : > { %847 = vmatpush3.bf16.msra.mxu0 %v1017_v3  ;;  %867 = vmatpush3.bf16.msra.mxu1 %v1017_v3 }
  0x90   : > { %848 = vmatprep.subr.bf16.mxu0 %v1281_v2  ;;  %868 = vmatprep.subr.bf16.mxu1 %v1281_v2 }
  0x93   : > { %849 = vmatpush3.bf16.msra.mxu0 %v1018_v4  ;;  %869 = vmatpush3.bf16.msra.mxu1 %v1018_v4 }
  0x94   : > { %850 = vmatprep.subr.bf16.mxu0 %v1281_v2  ;;  %870 = vmatprep.subr.bf16.mxu1 %v1281_v2 }
  0x97   : > { %851 = vmatpush3.bf16.msra.mxu0 %v1019_v5  ;;  %871 = vmatpush3.bf16.msra.mxu1 %v1019_v5 }
  0x98   : > { %852 = vmatprep.subr.bf16.mxu0 %v1281_v2  ;;  %872 = vmatprep.subr.bf16.mxu1 %v1281_v2 }
  0x9b   : > { %853 = vmatpush3.bf16.msra.mxu0 %v1020_v6  ;;  %873 = vmatpush3.bf16.msra.mxu1 %v1020_v6 }
  0x9c   : > { %854 = vmatprep.subr.bf16.mxu0 %v1281_v2  ;;  %874 = vmatprep.subr.bf16.mxu1 %v1281_v2 }
  0x9f   : > { %855 = vmatpush3.bf16.msra.mxu0 %v1021_v7  ;;  %875 = vmatpush3.bf16.msra.mxu1 %v1021_v7 }
  0xa0   : > { %856 = vmatprep.subr.bf16.mxu0 %v1281_v2  ;;  %876 = vmatprep.subr.bf16.mxu1 %v1281_v2 }
  0xa3   : > { %857 = vmatpush3.bf16.msra.mxu0 %v1022_v8  ;;  %877 = vmatpush3.bf16.msra.mxu1 %v1022_v8 }
  0xa4   : > { %858 = vmatprep.subr.bf16.mxu0 %v1281_v2  ;;  %878 = vmatprep.subr.bf16.mxu1 %v1281_v2 }
  0xa7   : > { %859 = vmatpush3.bf16.msra.mxu0 %v1023_v9  ;;  %879 = vmatpush3.bf16.msra.mxu1 %v1023_v9 }
  0xaa   : > { %861 = vmatmul.mubr.bf16.vlgmr.msra.gmra.mxu0 %v1024_v10  ;;  %881 = vmatmul.mubr.bf16.vlgmr.msra.gmra.mxu1 %v1025_v11 }
 0x16a   : > { %v1560_v12 = vpop.f32.mrf.mxu0  ;;  %v1562_v13 = vpop.f32.mrf.mxu1 }
 0x16c   : > { %v862_v14 = vpop.f32.mrf.mxu0  ;;  %v882_v15 = vpop.f32.mrf.mxu1  ;;  %532 = sbr.rel (%p813_p6) target bundleno = 391 (0x187), region = 64 }
 0x16e   : > { %v1564_v16 = vpop.f32.mrf.mxu0  ;;  %v1566_v17 = vpop.f32.mrf.mxu1 }
 0x170   : > { %v863_v18 = vpop.f32.mrf.mxu0  ;;  %v883_v19 = vpop.f32.mrf.mxu1 }
 0x171   : > { %v533_v20 = vadd.f32 %v1564_v16, %v1560_v12  ;;  %v540_v21 = vadd.f32 %v1566_v17, %v1562_v13  ;;  %v548_v22 = vmul.f32 %v1560_v12, %v1560_v12  ;;  %v549_v23 = vmul.f32 %v1564_v16, %v1564_v16  ;;  %v567_v49 = vld [vmem:[#allocation2] sm:$0x1]  ;;  %v570_v55 = vld [vmem:[#allocation2 + $0x1] sm:$0x1] }
 0x172   : > { %v557_v24 = vmul.f32 %v1562_v13, %v1562_v13  ;;  %v558_v25 = vmul.f32 %v1566_v17, %v1566_v17 }
 0x173   : > { %v534_v26 = vrot.slane %v533_v20, 4  ;;  %v541_v27 = vrot.slane %v540_v21, 4  ;;  %v550_v28 = vadd.f32 %v549_v23, %v548_v22 }
 0x174   : > { %v559_v29 = vadd.f32 %v558_v25, %v557_v24 }
 0x175   : > { %v535_v30 = vadd.f32 %v534_v26, %v533_v20  ;;  %v542_v31 = vadd.f32 %v541_v27, %v540_v21  ;;  %v551_v32 = vrot.slane %v550_v28, 4 }
 0x176   : > { %v560_v33 = vrot.slane %v559_v29, 4 }
 0x177   : > { %v536_v34 = vrot.slane %v535_v30, 2  ;;  %v543_v35 = vrot.slane %v542_v31, 2  ;;  %v552_v36 = vadd.f32 %v551_v32, %v550_v28 }
 0x178   : > { %v561_v37 = vadd.f32 %v560_v33, %v559_v29 }
 0x179   : > { %v537_v38 = vadd.f32 %v536_v34, %v535_v30  ;;  %v544_v39 = vadd.f32 %v543_v35, %v542_v31  ;;  %v553_v40 = vrot.slane %v552_v36, 2 }
 0x17a   : > { %v562_v41 = vrot.slane %v561_v37, 2 }
 0x17b   : > { %v538_v42 = vrot.slane %v537_v38, 1  ;;  %v545_v43 = vrot.slane %v544_v39, 1  ;;  %v554_v44 = vadd.f32 %v553_v40, %v552_v36 }
 0x17c   : > { %v563_v45 = vadd.f32 %v562_v41, %v561_v37 }
 0x17d   : > { %v539_v46 = vadd.f32 %v538_v42, %v537_v38  ;;  %v546_v47 = vadd.f32 %v545_v43, %v544_v39  ;;  %v555_v48 = vrot.slane %v554_v44, 1 }
 0x17e   : > { %v564_v50 = vrot.slane %v563_v45, 1 }
 0x17f   : > { %v547_v51 = vadd.f32 %v546_v47, %v539_v46  ;;  %v556_v52 = vadd.f32 %v555_v48, %v554_v44 }
 0x180   : > { %v565_v53 = vadd.f32 %v564_v50, %v563_v45 }
 0x181   : > { %v568_v54 = vadd.f32 %v567_v49, %v547_v51 }
 0x182   : > { %v566_v56 = vadd.f32 %v565_v53, %v556_v52 }
 0x183   : > { %569 = vst [vmem:[#allocation2] sm:$0x1] %v568_v54 }
 0x184   : > { %v571_v57 = vadd.f32 %v570_v55, %v566_v56 }
 0x186   : > { %572 = vst [vmem:[#allocation2 + $0x1] sm:$0x1] %v571_v57 }
 0x187 PF: > { %p573_p11 = scmp.eq.s32.totalorder %s1258_s25, 1 }
 0x189   : > { %p574_p8 = pnand %p573_p11, %p362_p13 }
 0x18a   : > { %s1718_s12 = sld [smem:[#allocation25_spill]] (!%p574_p8) }
 0x18b   : > { %577 = sbr.rel (%p574_p8) target bundleno = 432 (0x1b0), region = 68 }
 0x190   : > { %v578_v58 = vld [vmem:[#allocation2] sm:$0x1]  ;;  %v580_v59 = vld [vmem:[#allocation2 + $0x1] sm:$0x1] }
 0x191   : > { %v579_v60 = vmul.f32 0.05, %v578_v58  ;;  %v581_v61 = vmul.f32 0.05, %v580_v59  ;;  %v587_v2 = vld [vmem:[%s1718_s12] sm:$0x1] }
 0x192   : > { %v590_v5 = vld [vmem:[%s1718_s12 + $0x1] sm:$0x1] }
 0x193   : > { %v582_v62 = vmul.f32 %v579_v60, %v579_v60 }
 0x195   : > { %v583_v63 = vsub.f32 %v581_v61, %v582_v62 }
 0x197   : > { %v584_v0 = vmax.f32 %v583_v63, 0.0 }
 0x199   : > { %v585_v1 = vadd.f32 1e-05, %v584_v0 }
 0x19b   : > { %1026 = vrsqrt.f32 %v585_v1 }
 0x1a8   : > { %v1027_v3 = vpop.eup %1026 }
 0x1a9   : > { %v588_v4 = vmul.f32 %v1027_v3, %v587_v2 }
 0x1ab   : > { %589 = vst [vmem:[#allocation3] sm:$0x1] %v588_v4  ;;  %v591_v6 = vmul.f32 %v588_v4, %v579_v60 }
 0x1ad   : > { %v592_v7 = vsub.f32 %v590_v5, %v591_v6 }
 0x1af   : > { %593 = vst [vmem:[#allocation3 + $0x1] sm:$0x1] %v592_v7 }
 0x1b0 PF: > { %p814_p0 = scmp.ne.s32.totalorder %s1258_s25, 1 }
 0x1b2   : > { %596 = sbr.rel (%p814_p0) target bundleno = 450 (0x1c2), region = 72 }
 0x1b7   : > { %v815_v8 = vld [vmem:[#allocation3] ss:$0 sm:$0xff]  ;;  %v816_v9 = vld [vmem:[#allocation3 + $0x1] ss:$0 sm:$0xff]  ;;  %v621_v20 = vld [vmem:[%s1544_s3] sm:$0xff] }
 0x1b8   : > { %v603_v10 = vmul.f32 %v815_v8, %v1560_v12  ;;  %v613_v11 = vmul.f32 %v815_v8, %v1562_v13  ;;  %v604_v14 = vmul.f32 %v815_v8, %v1564_v16  ;;  %v614_v15 = vmul.f32 %v815_v8, %v1566_v17  ;;  %v622_v23 = vld [vmem:[%s1544_s3 + $0x8] sm:$0xff] }
 0x1b9   : > { %vm623_vm1 = vcmp.ge.f32.partialorder %v621_v20, 0.0  ;;  %vm624_vm2 = vcmp.ge.f32.partialorder %v622_v23, 0.0 }
 0x1ba   : > { %v609_v18 = vadd.f32 %v816_v9, %v603_v10  ;;  %v615_v19 = vadd.f32 %v816_v9, %v613_v11  ;;  %v610_v21 = vadd.f32 %v816_v9, %v604_v14  ;;  %v616_v22 = vadd.f32 %v816_v9, %v614_v15 }
 0x1bc   : > { %v611_v24 = vmax.f32 %v609_v18, 0.0  ;;  %v617_v25 = vmax.f32 %v615_v19, 0.0  ;;  %v612_v26 = vmax.f32 %v610_v21, 0.0  ;;  %v618_v27 = vmax.f32 %v616_v22, 0.0 }
 0x1be   : > { %v619_v12 = vmax.f32 %v611_v24, %v617_v25  ;;  %v620_v13 = vmax.f32 %v612_v26, %v618_v27 }
 0x1c0   : > { %v625_v28 = vsel %vm623_vm1, %v619_v12, 0.0  ;;  %v626_v16 = vsel %vm624_vm2, %v620_v13, 0.0 }
 0x1c1   : > { %627 = vst [vmem:[%s1554_s29] sm:$0xff] %v625_v28  ;;  %628 = vst [vmem:[%s1554_s29 + $0x8] sm:$0xff] %v626_v16 }
 0x1c2 PF: > { %s637_s14 = smul.u32 %s1254_s24, %s1258_s25  ;;  %s644_s11 = sshll.u32 %s1554_s29, 4  ;;  %s1602_s11 = int_to_ptr.vmem [resolvable:$true] %s644_s11 }
 0x1c3   : > { %s1719_s1 = sld [smem:[#allocation26_spill]]  ;;  %s630_s9 = scalar_lea.sflag [#allocation6], %s1540_s0 }
 0x1c4   : > { %s825_s18 = sshll.u32 %s637_s14, 8  ;;  %s1138_s15 = scalar_lea.vmem %s1602_s11, 256 }
 0x1c5   : > { %p1139_p2 = scmp.ne.s32.totalorder %s1602_s11, %s1138_s15  ;;  %p1720_p5 = scmp.ne.s32.totalorder %s1713_s30, 0 }
 0x1c6   : > { %s1283_s8 = smov [#allocation12]  }
 0x1c7   : > { %p1140_p7 = pnand %p1139_p2, %p1720_p5  ;;  %s1142_s24 = sshll.u32 %s1283_s8, 4  ;;  %s1143_s24 = int_to_ptr.vmem [resolvable:$false] %s1142_s24 }
 0x1c8   : > { %s1144_s25 = scalar_lea.vmem %s1143_s24, 512  ;;  %p1145_p3 = scmp.lt.s32.totalorder %s1602_s11, %s1143_s24 }
 0x1c9   : > { %s1607_s2 = scalar_lea.hbm %s1719_s1, %s825_s18  ;;  %p1141_p1 = pneg %p1140_p7 }
 0x1ca   : > { %p1146_p10 = scmp.lt.s32.totalorder %s1144_s25, %s1138_s15 }
 0x1cc   : > { %p1147_p12 = por %p1146_p10, %p1145_p3 }
 0x1ce   : > { %p1148_p4 = pnand %p1147_p12, %p1141_p1 }
 0x1d0   : > { %1151 = shalt.err (!%p1148_p4)
}
 0x1d1   : > { %s1152_s3 = scalar_lea.hbm %s1607_s2, 256  ;;  %s1156_s7 = scalar_lea.hbm %s1719_s1, 512 }
 0x1d2   : > { %p1153_p13 = scmp.ne.s32.totalorder %s1607_s2, %s1152_s3  ;;  %p1157_p11 = scmp.lt.s32.totalorder %s1607_s2, %s1719_s1 }
 0x1d3   : > { %p1158_p8 = scmp.lt.s32.totalorder %s1156_s7, %s1152_s3 }
 0x1d4   : > { %p1154_p9 = pnand %p1153_p13, %p1720_p5 }
 0x1d5   : > { %p1159_p0 = por %p1158_p8, %p1157_p11 }
 0x1d6   : > { %p1155_p6 = pneg %p1154_p9 }
 0x1d8   : > { %p1160_p2 = pnand %p1159_p0, %p1155_p6 }
 0x1da   : > { %1163 = shalt.err (!%p1160_p2)
}
 0x1db   : > { %s1284_s14 = smov 128   ;;  %s1285_s18 = smov 8  }
 0x1dc   : > { %894 = dma.vmem_to_hbm [thread:$0]  (%p1720_p5), %s1602_s11, 256, %s1607_s2, %s630_s9, %s1284_s14, %s1284_s14, %s1285_s18  }
 0x1dd PF: > { %s1721_s17 = sld [smem:[#allocation18_spill]]  ;;  %p917_p7 = scmp.ge.s32.totalorder %s1270_s28, 2 }
 0x1de   : > { %s1722_s16 = sld [smem:[#allocation19_spill]] }
 0x1e3   : > { %s659_s15 = sand.u32 1, %s1721_s17  }
 0x1e4   : > { %p1723_p1 = scmp.ne.s32.totalorder %s1722_s16, 0  ;;  %s660_s8 = scalar_lea.sflag [#allocation6], %s659_s15 }
 0x1e6   : > { %p911_p3 = pnand %p917_p7, %p1723_p1 }
 0x1e8   : > { %p912_p10 = pneg %p911_p3 }
 0x1ea   : > { %1225 = dma.done.wait (%p912_p10), %s660_s8, 256  }
 0x1eb   : > { %1227 = vsyncadd (%p912_p10), %s660_s8, 4294967040  ;;  %s27_s28 = sadd.s32 1, %s1270_s28   ;;  %s1724_s30 = smov %s1491_s21 }
 0x1ec   : > { %p24_p12 = scmp.ge.s32.totalorder %s27_s28, 6   ;;  %s1725_s0 = sld [smem:[#allocation20_spill]] }
 0x1ed   : > { %s1726_s11 = sld [smem:[#allocation21_spill]]  ;;  %s1727_s18 = smov %s1234_s19 }
 0x1ee   : > { %s1728_s19 = smov %s1238_s20  ;;  %s1729_s20 = smov %s1504_s5 }
 0x1ef   : > { %s1730_s21 = smov %s1246_s22  ;;  %s1731_s22 = smov %s1250_s23 }
 0x1f0   : > { %s1732_s23 = smov %s1724_s30  ;;  %s1733_s24 = smov %s1262_s26 }
 0x1f1   : > { %s1734_s25 = smov %s1266_s27  ;;  %26 = sbr.rel (!%p24_p12) target bundleno = 19 (0x13), region = 131 }
 0x1f2   : > { %s1735_s26 = smov %s1725_s0 }
 0x1f3   : > { %s1736_s27 = smov %s1726_s11 }
 0x1f6   :  { %665 = vsyncpa [#allocation5], 1 }
 0x1f7   :  { %667 = vsyncpa [#allocation5 + $0x1], 1 }
 0x1f8   :  { %668 = vsyncpa [#allocation8], 1 }
 0x1f9   :  { %670 = vsyncpa [#allocation8 + $0x1], 1 }
 0x1fa   :  { %671 = vsyncpa [#allocation11], 1 }
 0x1fb   :  { %673 = vsyncpa [#allocation11 + $0x1], 1 }
 0x1fc   :  { %674 = vsyncpa [#allocation6], 1 }
 0x1fd   :  { %676 = vsyncpa [#allocation6 + $0x1], 1 }

</bundles_post_ra>
